<compile_context>
chip_gen: v6e
topology: v6e:2x2x1
jax: 0.10.0
libtpu: 0.0.40
codegen_flags: <defaults>
</compile_context>

<pallas_src>
import jax
import jax.numpy as jnp
from jax.experimental import pallas as pl
from jax.experimental.pallas import tpu as pltpu

_LANES = 128           # vreg lane width — last dim must be a multiple of this.
_SUBLANES = 8          # vreg sublane count (f32) — row-tile granularity.
_MAX_LANE_DIM = 2048   # keep the whole lane extent inside one block (lane-dense).
_BLOCK_BYTES = 2 * 1024 * 1024  # 2 MiB per block; with in+out double-buffered
                                # => ~8 MiB of VMEM, safe on v5e/v6e/v7x defaults.


def _identity_kernel(x_ref, o_ref):
    # Pure pass-through: the module's forward has no compute.
    o_ref[...] = x_ref[...]


def _pallas_identity_2d(x2d: jax.Array) -> jax.Array:
    """Tiled identity copy of a lane-dense (R, C) slab through VMEM."""
    R, C = x2d.shape
    itemsize = jnp.dtype(x2d.dtype).itemsize

    # Row tile: as many sublane rows as fit the per-block byte budget.
    tile_r = max(_SUBLANES, (_BLOCK_BYTES // (C * itemsize)) // _SUBLANES * _SUBLANES)
    if R <= tile_r:
        tile_r = R  # full extent is always a legal block shape

    grid = (pl.cdiv(R, tile_r),)
    return pl.pallas_call(
        _identity_kernel,
        out_shape=jax.ShapeDtypeStruct((R, C), x2d.dtype),
        grid=grid,
        in_specs=[pl.BlockSpec((tile_r, C), lambda i: (i, 0))],
        out_specs=pl.BlockSpec((tile_r, C), lambda i: (i, 0)),
        compiler_params=pltpu.CompilerParams(
            # Row tiles are independent -> shard across both TensorCores on v7x.
            dimension_semantics=("parallel",),
        ),
    )(x2d)


@jax.jit
def _forward_copy(x: jax.Array) -> jax.Array:
    """Flatten to a lane-dense 2D slab, run the tiled identity kernel, restore shape."""
    total = x.size
    flat = x.reshape(-1)
    pad = (-total) % _LANES          # static Python int (shape-derived)
    if pad:
        flat = jnp.pad(flat, (0, pad))
    padded = total + pad

    # Grow the lane dim beyond 128 (up to 2048) while divisibility allows: fewer,
    # wider rows -> larger unmasked stores and bigger DMA bursts.
    cols = _LANES
    while cols * 2 <= _MAX_LANE_DIM and padded % (cols * 2) == 0:
        cols *= 2
    x2d = flat.reshape(padded // cols, cols)

    y2d = _pallas_identity_2d(x2d)
    return y2d.reshape(-1)[:total].reshape(x.shape)


class DummyPrimaryModelPallas:
    """JAX/Pallas port of DummyPrimaryModel (no parameters, forward returns None)."""

    def __init__(self, debug_pallas_touch: bool = False):
        # nn.Module.__init__ defines no parameters; nothing to initialize.
        # The Pallas identity is kept only as a debugging/template path —
        # dispatching it per call would be 100% dead work.
        self._debug_pallas_touch = debug_pallas_touch

    def forward(self, x: jax.Array):
        if self._debug_pallas_touch:
            jax.block_until_ready(_forward_copy(x))
        # TODO(synk): reference forward body is `return` (None) — no output to produce.
        return None

    __call__ = forward


if __name__ == "__main__":
    key = jax.random.PRNGKey(0)
    # Small NCHW input consistent with a conv-style classifier front end.
    x = jax.random.normal(key, (2, 4, 16, 16), dtype=jnp.float32)

    # Exercise the Pallas identity template once to prove it compiles/runs on TPU.
    y = _forward_copy(x)
    jax.block_until_ready(y)
    assert y.shape == x.shape
    assert jnp.allclose(y, x)

    # Semantics check: the module's forward returns None and dispatches nothing.
    model = DummyPrimaryModelPallas()
    out = model(x)
    assert out is None

    print("KERNEL_OK")
</pallas_src>

<mosaic_0001>
module attributes {stable_mosaic.version = 11 : i64} {
  func.func @_identity_kernel(%arg0: i32, %arg1: memref<1x2048xf32, #tpu.memory_space<vmem>>, %arg2: memref<1x2048xf32, #tpu.memory_space<vmem>>) attributes {dimension_semantics = [#tpu.dimension_semantics<parallel>], iteration_bounds = array<i64: 1>, scalar_prefetch = 0 : i64, scratch_operands = 0 : i64, tpu.core_type = #tpu.core_type<tc>, window_params = [{transform_indices = @transform_0, window_bounds = array<i64: 1, 2048>}, {transform_indices = @transform_1, window_bounds = array<i64: 1, 2048>}]} {
    %c0 = arith.constant 0 : index
    %c0_0 = arith.constant 0 : index
    %0 = vector.load %arg1[%c0, %c0_0] : memref<1x2048xf32, #tpu.memory_space<vmem>>, vector<1x2048xf32>
    %c0_1 = arith.constant 0 : index
    %c0_2 = arith.constant 0 : index
    %1 = vector.load %arg2[%c0_1, %c0_2] : memref<1x2048xf32, #tpu.memory_space<vmem>>, vector<1x2048xf32>
    tpu.vector_store %arg2[%c0_1, %c0_2], %0 {strides = array<i32>} : memref<1x2048xf32, #tpu.memory_space<vmem>>, vector<1x2048xf32>,
    return
  }
  func.func @transform_0(%arg0: i32) -> (i32, i32) {
    %c0_i32 = arith.constant 0 : i32
    %c0_i32_0 = arith.constant 0 : i32
    return %arg0, %c0_i32 : i32, i32
  }
  func.func @transform_1(%arg0: i32) -> (i32, i32) {
    %c0_i32 = arith.constant 0 : i32
    %c0_i32_0 = arith.constant 0 : i32
    return %arg0, %c0_i32 : i32, i32
  }
}

</mosaic_0001>

<bundles_post_ra>
// kernel: _forward_copy.1
= control target key start
LH: loop header
LB: loop body
LE: loop exit
PB: predicated region body
PF: predicated region fallthrough
CT: control target
= control target key end

     0   :  { %s38_s0 = inlined_call_operand.vmem [shape: f32[1,2048], index: 0, kind: input, shape index: {}]   ;;  %s39_s1 = inlined_call_operand.vmem [shape: f32[1,2048], index: 1, kind: output, shape index: {}]  }
   0x1   :  { %v8_v0 = vld [vmem:[%s38_s0] sm:$0xff]  ;;  %v9_v1 = vld [vmem:[%s38_s0 + $0x8] sm:$0xff] }
   0x2   :  { %10 = vst [vmem:[%s39_s1] sm:$0xff] %v8_v0  ;;  %11 = vst [vmem:[%s39_s1 + $0x8] sm:$0xff] %v9_v1 }

</bundles_post_ra>
